<compile_context>
chip_gen: v5e
topology: v5e:2x2
jax: 0.10.0
libtpu: 0.0.40
codegen_flags: <defaults>
</compile_context>

<pallas_src>
import math

import jax
import jax.numpy as jnp
from jax.experimental import pallas as pl
from jax.experimental.pallas import tpu as pltpu


def _round_up(n: int, m: int) -> int:
    return ((n + m - 1) // m) * m


# ----------------------------------------------------------------------------
# Kernel: one (row-tile i, ff-tile j) step of  out = relu(x @ W0 + b0) @ W1 + b1
# Ref order: x, W0, b0, W1, b1, out, acc_scratch
# ----------------------------------------------------------------------------
def _ffn_kernel(x_ref, w0_ref, b0_ref, w1_ref, b1_ref, o_ref, acc_ref):
    j = pl.program_id(1)

    @pl.when(j == 0)
    def _init():
        acc_ref[...] = jnp.zeros_like(acc_ref)

    # Layer 0: bf16 operands on the MXU, f32 accumulation; bias + ReLU in f32.
    h = jnp.dot(x_ref[...].astype(jnp.bfloat16), w0_ref[...],
                preferred_element_type=jnp.float32)
    h = jnp.maximum(h + b0_ref[...], 0.0)                      # (tm, tf) f32

    # Layer 1: partial contraction over this ff tile, accumulated in f32 VMEM.
    acc_ref[...] += jnp.dot(h.astype(jnp.bfloat16), w1_ref[...],
                            preferred_element_type=jnp.float32)

    @pl.when(j == pl.num_programs(1) - 1)
    def _finalize():
        o_ref[...] = (acc_ref[...] + b1_ref[...]).astype(o_ref.dtype)


# ----------------------------------------------------------------------------
# Wrapper: FFN forward, fused in a single pallas_call.
# ----------------------------------------------------------------------------
def ffn_pallas(x, params, *, max_rows_per_tile: int = 512, max_ff_tile: int = 512):
    """y = relu(x @ W0 + b0) @ W1 + b1, params = [(W0, b0), (W1, b1)], W as (in, out)."""
    (w0, b0), (w1, b1) = params                 # FFN is always exactly 2 layers
    hidden, ff = w0.shape
    n_out = w1.shape[1]
    assert x.shape[-1] == hidden and w1.shape[0] == ff
    assert b0.shape == (ff,) and b1.shape == (n_out,)

    lead_shape = x.shape[:-1]
    x2 = x.reshape(-1, hidden)
    M = x2.shape[0]

    # Row tiling: nearly-full tiles (bounded padding waste), >=2 tiles when
    # possible so the "parallel" axis has work for both v7x TensorCores.
    n_row_tiles = max(pl.cdiv(M, max_rows_per_tile), 2 if M >= 16 else 1)
    tm = _round_up(pl.cdiv(M, n_row_tiles), 8)
    if tm >= 16:
        tm = _round_up(tm, 16)                  # bf16 packs 2 rows per sublane
    M_pad = _round_up(M, tm)
    if M_pad != M:
        # TODO(synk): handle the ragged tail in-kernel instead of an HBM copy.
        x2 = jnp.pad(x2, ((0, M_pad - M), (0, 0)))
    n_row_tiles = M_pad // tm

    # ff tiling: whole ff when small, else a 256-multiple tile (v6e/v7x MXU).
    if ff <= max_ff_tile:
        tf = ff
    else:
        tf = next((c for c in (512, 256, 128) if ff % c == 0), ff)
    n_ff_tiles = ff // tf

    # bf16 weights (MXU-native, half the HBM/VMEM traffic); biases stay f32.
    w0_bf = w0.astype(jnp.bfloat16)
    w1_bf = w1.astype(jnp.bfloat16)
    b0_row = b0.reshape(1, ff).astype(jnp.float32)
    b1_row = b1.reshape(1, n_out).astype(jnp.float32)

    # Explicit VMEM budget so the default scoped cap never constrains tiling.
    vmem_needed = (
        2 * tm * hidden * 4                        # x tile (f32, double-buffered)
        + 2 * tm * n_out * 4                       # out tile (f32, double-buffered)
        + 2 * (hidden * tf + tf * n_out) * 2       # W0/W1 tiles (bf16, double-buffered)
        + 2 * (tf + n_out) * 4                     # bias tiles
        + tm * n_out * 4                           # f32 accumulator scratch
        + 2 * tm * tf * 4                          # (tm, tf) intermediate headroom
    )
    vmem_limit = int(min(64 * 2**20, max(2 * vmem_needed, 16 * 2**20)))

    cost = pl.CostEstimate(
        flops=2 * M_pad * (hidden * ff + ff * n_out),
        transcendentals=0,
        bytes_accessed=(M_pad * hidden * 4 + M_pad * n_out * 4
                        + (hidden * ff + ff * n_out) * 2
                        + (ff + n_out) * 4),
    )

    out = pl.pallas_call(
        _ffn_kernel,
        out_shape=jax.ShapeDtypeStruct((M_pad, n_out), x.dtype),
        grid_spec=pltpu.PrefetchScalarGridSpec(
            num_scalar_prefetch=0,
            grid=(n_row_tiles, n_ff_tiles),                     # ff (reduction) innermost
            in_specs=[
                pl.BlockSpec((tm, hidden), lambda i, j: (i, 0)),    # x row tile
                pl.BlockSpec((hidden, tf), lambda i, j: (0, j)),    # W0 ff tile
                pl.BlockSpec((1, tf), lambda i, j: (0, j)),         # b0 ff tile
                pl.BlockSpec((tf, n_out), lambda i, j: (j, 0)),     # W1 ff tile
                pl.BlockSpec((1, n_out), lambda i, j: (0, 0)),      # b1 (resident)
            ],
            out_specs=pl.BlockSpec((tm, n_out), lambda i, j: (i, 0)),
            scratch_shapes=[pltpu.VMEM((tm, n_out), jnp.float32)],
        ),
        compiler_params=pltpu.CompilerParams(
            dimension_semantics=("parallel", "arbitrary"),
            vmem_limit_bytes=vmem_limit,
        ),
        cost_estimate=cost,
    )(x2, w0_bf, b0_row, w1_bf, b1_row)

    return out[:M].reshape(*lead_shape, n_out)


# ----------------------------------------------------------------------------
# Parameter init (matches nn.Linear defaults) and plain-JAX reference.
# ----------------------------------------------------------------------------
def init_fcn_params(key, dims):
    """nn.Linear default init: U(-1/sqrt(fan_in), 1/sqrt(fan_in)); W stored (in, out)."""
    params = []
    for i in range(len(dims) - 1):
        fan_in, fan_out = dims[i], dims[i + 1]
        bound = 1.0 / math.sqrt(fan_in)
        key, kw, kb = jax.random.split(key, 3)
        w = jax.random.uniform(kw, (fan_in, fan_out), jnp.float32, -bound, bound)
        b = jax.random.uniform(kb, (fan_out,), jnp.float32, -bound, bound)
        params.append((w, b))
    return params


def ffn_forward(x, params):
    """FFN forward: Linear -> ReLU -> Linear, fused in one Pallas kernel."""
    return ffn_pallas(x, params)


def ffn_forward_ref(x, params):
    """Plain-JAX f32 reference for correctness checking."""
    out = x
    for i, (w, b) in enumerate(params):
        out = out @ w + b
        if i < len(params) - 1:
            out = jnp.maximum(out, 0.0)
    return out


if __name__ == "__main__":
    key = jax.random.PRNGKey(0)

    # FFN(hidden_size=128, ff_size=256, dropout=0.0); lane-dense feature dims.
    hidden_size, ff_size = 128, 256
    batch, seq = 2, 8
    dims = [hidden_size, ff_size, hidden_size]

    kx, kp = jax.random.split(key)
    x = jax.random.normal(kx, (batch, seq, hidden_size), jnp.float32)
    params = init_fcn_params(kp, dims)

    y = ffn_forward(x, params)
    y = jax.block_until_ready(y)

    y_ref = ffn_forward_ref(x, params)
    assert y.shape == (batch, seq, hidden_size)
    # bf16 matmul operands (f32 accumulation) vs f32 reference -> loosened tolerance.
    assert jnp.allclose(y, y_ref, atol=3e-2, rtol=3e-2), "mismatch vs reference"

    print("KERNEL_OK")
</pallas_src>

<mosaic_0001>
module attributes {stable_mosaic.version = 11 : i64} {
  func.func @_ffn_kernel(%arg0: i32, %arg1: i32, %arg2: memref<8x128xf32, #tpu.memory_space<vmem>>, %arg3: memref<128x256xbf16, #tpu.memory_space<vmem>>, %arg4: memref<1x256xf32, #tpu.memory_space<vmem>>, %arg5: memref<256x128xbf16, #tpu.memory_space<vmem>>, %arg6: memref<1x128xf32, #tpu.memory_space<vmem>>, %arg7: memref<8x128xf32, #tpu.memory_space<vmem>>, %arg8: memref<8x128xf32, #tpu.memory_space<vmem>>) attributes {dimension_semantics = [#tpu.dimension_semantics<parallel>, #tpu.dimension_semantics<arbitrary>], iteration_bounds = array<i64: 2, 1>, scalar_prefetch = 0 : i64, scratch_operands = 1 : i64, tpu.core_type = #tpu.core_type<tc>, window_params = [{transform_indices = @transform_0, window_bounds = array<i64: 8, 128>}, {transform_indices = @transform_1, window_bounds = array<i64: 128, 256>}, {transform_indices = @transform_2, window_bounds = array<i64: 1, 256>}, {transform_indices = @transform_3, window_bounds = array<i64: 256, 128>}, {pipeline_mode = #tpu.pipeline_mode<synchronous>, transform_indices = @transform_4, window_bounds = array<i64: 1, 128>}, {transform_indices = @transform_5, window_bounds = array<i64: 8, 128>}]} {
    %c0_i32 = arith.constant 0 : i32
    %0 = arith.cmpi eq, %arg1, %c0_i32 : i32
    %1 = arith.extui %0 : i1 to i32
    %c0_i32_0 = arith.constant 0 : i32
    %2 = arith.cmpi ne, %1, %c0_i32_0 : i32
    scf.if %2 {
      %cst_16 = arith.constant 0.000000e+00 : f32
      %21 = vector.broadcast %cst_16 : f32 to vector<8x128xf32>
      %c0_17 = arith.constant 0 : index
      %c0_18 = arith.constant 0 : index
      %22 = vector.load %arg8[%c0_17, %c0_18] : memref<8x128xf32, #tpu.memory_space<vmem>>, vector<8x128xf32>
      tpu.vector_store %arg8[%c0_17, %c0_18], %21 {strides = array<i32>} : memref<8x128xf32, #tpu.memory_space<vmem>>, vector<8x128xf32>,
    } else {
    }
    %c0 = arith.constant 0 : index
    %c0_1 = arith.constant 0 : index
    %3 = vector.load %arg2[%c0, %c0_1] : memref<8x128xf32, #tpu.memory_space<vmem>>, vector<8x128xf32>
    %4 = arith.truncf %3 : vector<8x128xf32> to vector<8x128xbf16>
    %c0_2 = arith.constant 0 : index
    %c0_3 = arith.constant 0 : index
    %5 = vector.load %arg3[%c0_2, %c0_3] : memref<128x256xbf16, #tpu.memory_space<vmem>>, vector<128x256xbf16>
    %cst = arith.constant dense<0.000000e+00> : vector<8x256xf32>
    %6 = tpu.matmul %4, %5, %cst {dimension_numbers = #tpu.dot_dimension_numbers<[1], [0], [0], [1], [0, 0, 1, 1], [], []>} : vector<8x128xbf16>, vector<128x256xbf16>, vector<8x256xf32> -> vector<8x256xf32>
    %c0_4 = arith.constant 0 : index
    %c0_5 = arith.constant 0 : index
    %7 = vector.load %arg4[%c0_4, %c0_5] : memref<1x256xf32, #tpu.memory_space<vmem>>, vector<1x256xf32>
    %8 = vector.broadcast %7 : vector<1x256xf32> to vector<8x256xf32>
    %9 = arith.addf %6, %8 : vector<8x256xf32>
    %cst_6 = arith.constant 0.000000e+00 : f32
    %10 = vector.broadcast %cst_6 : f32 to vector<8x256xf32>
    %11 = arith.maximumf %9, %10 : vector<8x256xf32>
    %c0_7 = arith.constant 0 : index
    %c0_8 = arith.constant 0 : index
    %12 = vector.load %arg8[%c0_7, %c0_8] : memref<8x128xf32, #tpu.memory_space<vmem>>, vector<8x128xf32>
    %13 = arith.truncf %11 : vector<8x256xf32> to vector<8x256xbf16>
    %c0_9 = arith.constant 0 : index
    %c0_10 = arith.constant 0 : index
    %14 = vector.load %arg5[%c0_9, %c0_10] : memref<256x128xbf16, #tpu.memory_space<vmem>>, vector<256x128xbf16>
    %cst_11 = arith.constant dense<0.000000e+00> : vector<8x128xf32>
    %15 = tpu.matmul %13, %14, %cst_11 {dimension_numbers = #tpu.dot_dimension_numbers<[1], [0], [0], [1], [0, 0, 1, 1], [], []>} : vector<8x256xbf16>, vector<256x128xbf16>, vector<8x128xf32> -> vector<8x128xf32>
    %16 = arith.addf %12, %15 : vector<8x128xf32>
    %c0_12 = arith.constant 0 : index
    %c0_13 = arith.constant 0 : index
    %17 = vector.load %arg8[%c0_12, %c0_13] : memref<8x128xf32, #tpu.memory_space<vmem>>, vector<8x128xf32>
    tpu.vector_store %arg8[%c0_12, %c0_13], %16 {strides = array<i32>} : memref<8x128xf32, #tpu.memory_space<vmem>>, vector<8x128xf32>,
    %c0_i32_14 = arith.constant 0 : i32
    %18 = arith.cmpi eq, %arg1, %c0_i32_14 : i32
    %19 = arith.extui %18 : i1 to i32
    %c0_i32_15 = arith.constant 0 : i32
    %20 = arith.cmpi ne, %19, %c0_i32_15 : i32
    scf.if %20 {
      %c0_16 = arith.constant 0 : index
      %c0_17 = arith.constant 0 : index
      %21 = vector.load %arg8[%c0_16, %c0_17] : memref<8x128xf32, #tpu.memory_space<vmem>>, vector<8x128xf32>
      %c0_18 = arith.constant 0 : index
      %c0_19 = arith.constant 0 : index
      %22 = vector.load %arg6[%c0_18, %c0_19] : memref<1x128xf32, #tpu.memory_space<vmem>>, vector<1x128xf32>
      %23 = vector.broadcast %22 : vector<1x128xf32> to vector<8x128xf32>
      %24 = arith.addf %21, %23 : vector<8x128xf32>
      %c0_20 = arith.constant 0 : index
      %c0_21 = arith.constant 0 : index
      %25 = vector.load %arg7[%c0_20, %c0_21] : memref<8x128xf32, #tpu.memory_space<vmem>>, vector<8x128xf32>
      tpu.vector_store %arg7[%c0_20, %c0_21], %24 {strides = array<i32>} : memref<8x128xf32, #tpu.memory_space<vmem>>, vector<8x128xf32>,
    } else {
    }
    return
  }
  func.func @transform_0(%arg0: i32, %arg1: i32) -> (i32, i32) {
    %c0_i32 = arith.constant 0 : i32
    %c0_i32_0 = arith.constant 0 : i32
    return %arg0, %c0_i32 : i32, i32
  }
  func.func @transform_1(%arg0: i32, %arg1: i32) -> (i32, i32) {
    %c0_i32 = arith.constant 0 : i32
    %c0_i32_0 = arith.constant 0 : i32
    return %c0_i32, %arg1 : i32, i32
  }
  func.func @transform_2(%arg0: i32, %arg1: i32) -> (i32, i32) {
    %c0_i32 = arith.constant 0 : i32
    %c0_i32_0 = arith.constant 0 : i32
    return %c0_i32, %arg1 : i32, i32
  }
  func.func @transform_3(%arg0: i32, %arg1: i32) -> (i32, i32) {
    %c0_i32 = arith.constant 0 : i32
    %c0_i32_0 = arith.constant 0 : i32
    return %arg1, %c0_i32 : i32, i32
  }
  func.func @transform_4(%arg0: i32, %arg1: i32) -> (i32, i32) {
    %c0_i32 = arith.constant 0 : i32
    %c0_i32_0 = arith.constant 0 : i32
    %c0_i32_1 = arith.constant 0 : i32
    return %c0_i32, %c0_i32_0 : i32, i32
  }
  func.func @transform_5(%arg0: i32, %arg1: i32) -> (i32, i32) {
    %c0_i32 = arith.constant 0 : i32
    %c0_i32_0 = arith.constant 0 : i32
    return %arg0, %c0_i32 : i32, i32
  }
}

</mosaic_0001>

<bundles_post_ra>
// kernel: tpu_custom_call.1
= control target key start
LH: loop header
LB: loop body
LE: loop exit
PB: predicated region body
PF: predicated region fallthrough
CT: control target
= control target key end

     0   :  { %10 = vsyncpa [#allocation4], 0  ;;  %s1466_s0 = inlined_call_operand.hbm [shape: f32[16,128], index: 0, kind: input, shape index: {}]   ;;  %s1467_s1 = inlined_call_operand.hbm [shape: bf16[128,256], index: 1, kind: input, shape index: {}]   ;;  %s1468_s2 = inlined_call_operand.hbm [shape: f32[1,256], index: 2, kind: input, shape index: {}]   ;;  %s1469_s3 = inlined_call_operand.hbm [shape: bf16[256,128], index: 3, kind: input, shape index: {}]   ;;  %s1470_s4 = inlined_call_operand.vmem [shape: f32[1,128], index: 4, kind: input, shape index: {}]   ;;  %s1471_s5 = inlined_call_operand.hbm [shape: f32[16,128], index: 5, kind: output, shape index: {}]  }
   0x1   :  { %12 = vsyncpa [#allocation4 + $0x1], 0 }
   0x2   :  { %13 = vsyncpa [#allocation7], 0 }
   0x3   :  { %14 = vsyncpa [#allocation10], 0 }
   0x4   :  { %15 = vsyncpa [#allocation5], 0 }
   0x5   :  { %17 = vsyncpa [#allocation5 + $0x1], 0  ;;  %s1289_s18 = smov 0   ;;  %s1291_s19 = smov 0  }
   0x6   :  { %s1293_s20 = smov 0   ;;  %s1295_s21 = smov 0  }
   0x7   :  { %s1297_s22 = smov 0   ;;  %s1299_s23 = smov 0  }
   0x8 LB: > { %s763_s24 = sadd.s32 4294967295, %s1250_s23   ;;  %p765_p0 = scmp.ge.s32.totalorder %s1250_s23, 1  ;;  %s1250_s23 = sphi %s1299_s23, %s23_s23   ;;  %s1246_s22 = sphi %s1297_s22, %s1483_s22   ;;  %s1242_s21 = sphi %s1295_s21, %s1482_s21   ;;  %s1238_s20 = sphi %s1293_s20, %s1481_s20   ;;  %s1234_s19 = sphi %s1291_s19, %s1480_s19   ;;  %s1230_s18 = sphi %s1289_s18, %s1479_s18  }
   0x9   : > { %p1323_p1 = scmp.eq.s32.totalorder %s763_s24, 0  ;;  %p191_p2 = scmp.lt.s32.totalorder %s1250_s23, 3 }
   0xa   : > { %s205_s28 = sshll.u32 %s1467_s1, 4  ;;  %s1252_s30 = smov [#allocation6]   ;;  %s206_s28 = int_to_ptr.hbm [resolvable:$true] %s205_s28 }
   0xb   : > { %p1331_p3 = pnand %p765_p0, %p191_p2  ;;  %s207_s6 = sshll.u32 %s1252_s30, 4  ;;  %s208_s6 = int_to_ptr.vmem [resolvable:$true] %s207_s6 }
   0xc   : > { %p769_p6 = scmp.ge.s32.totalorder %s1250_s23, 2  ;;  %s222_s10 = sshll.u32 %s1468_s2, 4  ;;  %s223_s10 = int_to_ptr.hbm [resolvable:$true] %s222_s10 }
   0xd   : > { %p958_p4 = pneg %p1331_p3  ;;  %s1253_s11 = smov 128  }
   0xe   : > { %s1254_s12 = smov 8   ;;  %s1255_s13 = smov [#allocation8]  }
   0xf   : > { %p1339_p5 = pnand %p958_p4, %p1323_p1  ;;  %s224_s14 = sshll.u32 %s1255_s13, 4  ;;  %s225_s14 = int_to_ptr.vmem [resolvable:$true] %s224_s14 }
  0x10   : > { %s236_s17 = sshll.u32 %s1469_s3, 4  ;;  %s1256_s26 = smov [#allocation9]   ;;  %s237_s17 = int_to_ptr.hbm [resolvable:$true] %s236_s17 }
  0x11   : > { %961 = dma.hbm_to_vmem [thread:$0]  (!%p1339_p5), %s206_s28, 2048, %s208_s6, [#allocation7], %s1253_s11, %s1253_s11, %s1254_s12  }
  0x12   : > { %964 = dma.hbm_to_vmem [thread:$0]  (!%p1339_p5), %s223_s10, 32, %s225_s14, [#allocation7]  }
  0x13   : > { %s238_s27 = sshll.u32 %s1256_s26, 4  ;;  %s1257_s28 = smov 64   ;;  %s239_s27 = int_to_ptr.vmem [resolvable:$true] %s238_s27 }
  0x14   : > { %s1258_s30 = smov 4   ;;  %s764_s6 = sadd.s32 4294967294, %s1250_s23  }
  0x15   : > { %967 = dma.hbm_to_vmem [thread:$0]  (!%p1339_p5), %s237_s17, 2048, %s239_s27, [#allocation10], %s1257_s28, %s1257_s28, %s1258_s30  }
  0x16   : > { %s35_s8 = sadd.s32 1, %s1246_s22  ;;  %s42_s9 = sadd.s32 1, %s1238_s20 }
  0x17   : > { %p37_p7 = scmp.ge.s32.totalorder %s35_s8, 2  ;;  %p49_p8 = scmp.ne.s32.totalorder %s1238_s20, %s1234_s19 }
  0x18   : > { %p50_p9 = scmp.eq.s32.totalorder %s1250_s23, 0  ;;  %p55_p10 = scmp.ne.s32.totalorder %s1234_s19, %s1230_s18 }
  0x19   : > { %s1485_s8 = smov (%p37_p7, %s35_s8), 0  ;;  %p178_p13 = scmp.eq.s32.totalorder %s763_s24, 1 }
  0x1a   : > { %p1366_p11 = por %p50_p9, %p49_p8  ;;  %p1372_p12 = por %p1323_p1, %p55_p10 }
  0x1b   : > { %s39_s11 = ssub.s32 %s1246_s22, %s1485_s8  ;;  %p184_p2 = scmp.eq.s32.totalorder %s764_s6, 1 }
  0x1c   : > { %p40_p0 = scmp.eq.s32.totalorder %s39_s11, 0  ;;  %p1380_p4 = por %p178_p13, %p49_p8 }
  0x1d   : > { %p979_p5 = scmp.lt.s32.totalorder %s1250_s23, 2  ;;  %p1388_p7 = por %p184_p2, %p55_p10 }
  0x1e   : > { %s1386_s13 = scalar_select %p40_p0, %s1238_s20, %s42_s9  }
  0x1f   : > { %s255_s15 = sand.u32 1, %s1238_s20   ;;  %s771_s17 = sshll.u32 %s1246_s22, 3 }
  0x20   : > { %s770_s16 = sshll.u32 %s255_s15, 3  ;;  %s263_s24 = scalar_lea.hbm %s1466_s0, %s771_s17 }
  0x21   : > { %s259_s28 = scalar_lea.vmem [#allocation3], %s770_s16  ;;  %s265_s6 = sshll.u32 %s263_s24, 4  ;;  %s266_s6 = int_to_ptr.hbm [resolvable:$true] %s265_s6 }
  0x22   : > { %s267_s30 = sshll.u32 %s259_s28, 4  ;;  %p969_p8 = pnand %p979_p5, %p1366_p11  ;;  %s268_s30 = int_to_ptr.vmem [resolvable:$true] %s267_s30 }
  0x23   : > { %s256_s9 = scalar_lea.sflag [#allocation4], %s255_s15  ;;  %276 = sbr.rel (%p1331_p3) target bundleno = 352 (0x160), region = 40 }
  0x24   : > { %971 = dma.hbm_to_vmem [thread:$0]  (!%p969_p8), %s266_s6, 128, %s268_s30, %s256_s9  }
  0x25   : > { %s1402_s11 = sand.u32 (!%p1331_p3), 1, %s1234_s19  }
  0x26   : > { %s773_s17 = sshll.u32 (!%p1331_p3), %s1402_s11, 3  ;;  %s279_s16 = scalar_lea.sflag (!%p1331_p3), [#allocation4], %s1402_s11 }
  0x27   : > { %s1408_s26 = scalar_lea.vmem (!%p1331_p3), [#allocation3], %s773_s17 }
  0x28   : > { %1213 = dma.done.wait (%p1372_p12), %s279_s16, 128  }
  0x29   : > { %1215 = vsyncadd (%p1372_p12), %s279_s16, 4294967168 }
  0x2a   : > { %1217 = dma.done.wait (%p1323_p1), [#allocation7], 2080  }
  0x2b   : > { %1219 = vsyncadd (%p1323_p1), [#allocation7], 4294965216 }
  0x2c   : > { %1221 = dma.done.wait (%p1323_p1), [#allocation10], 2048  }
  0x2d   : > { %1223 = vsyncadd (%p1323_p1), [#allocation10], 4294965248  ;;  %v836_v0 = vld [vmem:[#allocation6 + $0x70] sm:$0xf]  ;;  %v925_v1 = vld [vmem:[#allocation6 + $0x74] sm:$0xf0] }
  0x2e   : > { %v924_v2 = vld [vmem:[#allocation6 + $0x74] sm:$0xf]  ;;  %v837_v3 = vor.u32 %v925_v1, %v836_v0  ;;  %v838_v4 = vld [vmem:[#allocation6 + $0x78] sm:$0xf0]  ;;  %v828_v5 = vld [vmem:[#allocation6 + $0x60] sm:$0xf] }
  0x2f   : > { %v923_v6 = vld [vmem:[#allocation6 + $0x64] sm:$0xf0]  ;;  %v841_v7 = vor.u32 %v924_v2, %v838_v4  ;;  %v922_v8 = vld [vmem:[#allocation6 + $0x64] sm:$0xf]  ;;  %v830_v9 = vld [vmem:[#allocation6 + $0x68] sm:$0xf0] }
  0x30   : > { %437 = vmatpush.bf16.msra.mxu0 %v837_v3  ;;  %v829_v10 = vor.u32 %v923_v6, %v828_v5  ;;  %v833_v11 = vor.u32 %v922_v8, %v830_v9  ;;  %v820_v12 = vld [vmem:[#allocation6 + $0x50] sm:$0xf]  ;;  %v921_v13 = vld [vmem:[#allocation6 + $0x54] sm:$0xf0]  ;;  %v920_v14 = vld [vmem:[#allocation6 + $0x54] sm:$0xf] }
  0x31   : > { %450 = vmatpush.bf16.msra.mxu1 %v841_v7  ;;  %v822_v15 = vld [vmem:[#allocation6 + $0x58] sm:$0xf0]  ;;  %v821_v16 = vor.u32 %v921_v13, %v820_v12  ;;  %v812_v18 = vld [vmem:[#allocation6 + $0x40] sm:$0xf]  ;;  %v919_v19 = vld [vmem:[#allocation6 + $0x44] sm:$0xf0] }
  0x32   : > { %v825_v17 = vor.u32 %v920_v14, %v822_v15  ;;  %v918_v20 = vld [vmem:[#allocation6 + $0x44] sm:$0xf]  ;;  %v814_v21 = vld [vmem:[#allocation6 + $0x48] sm:$0xf0]  ;;  %v813_v22 = vor.u32 %v919_v19, %v812_v18  ;;  %v933_v23 = vld [vmem:[#allocation9 + $0x38] sm:$0xff]  ;;  %s907_s25 = sshll.u32 %s1242_s21, 3 }
  0x33   : > { %v941_v24 = vld [vmem:[#allocation9 + $0x78] sm:$0xff]  ;;  %v817_v25 = vor.u32 %v918_v20, %v814_v21  ;;  %v804_v26 = vld [vmem:[#allocation6 + $0x30] sm:$0xf]  ;;  %v916_v28 = vld [vmem:[#allocation6 + $0x34] sm:$0xf]  ;;  %596 = vmatpush.bf16.msra.mxu2 %v933_v23  ;;  %s645_s7 = scalar_lea.hbm %s1471_s5, %s907_s25  ;;  %s324_s24 = scalar_lea.vmem [#allocation11], %s773_s17 }
  0x34   : > { %438 = vmatpush.bf16.msra.mxu0 %v829_v10  ;;  %v917_v27 = vld [vmem:[#allocation6 + $0x34] sm:$0xf0]  ;;  %v806_v29 = vld [vmem:[#allocation6 + $0x38] sm:$0xf0]  ;;  %609 = vmatpush.bf16.msra.mxu3 %v941_v24  ;;  %v796_v34 = vld [vmem:[#allocation6 + $0x20] sm:$0xf] }
  0x35   : > { %451 = vmatpush.bf16.msra.mxu1 %v833_v11  ;;  %v932_v30 = vld [vmem:[#allocation9 + $0x30] sm:$0xff]  ;;  %v805_v32 = vor.u32 %v917_v27, %v804_v26  ;;  %v809_v33 = vor.u32 %v916_v28, %v806_v29  ;;  %v915_v35 = vld [vmem:[#allocation6 + $0x24] sm:$0xf0]  ;;  %v914_v36 = vld [vmem:[#allocation6 + $0x24] sm:$0xf]  ;;  %s647_s28 = sshll.u32 %s324_s24, 4  ;;  %s648_s28 = int_to_ptr.vmem [resolvable:$true] %s647_s28 }
  0x36   : > { %v940_v31 = vld [vmem:[#allocation9 + $0x70] sm:$0xff]  ;;  %v798_v37 = vld [vmem:[#allocation6 + $0x28] sm:$0xf0]  ;;  %v797_v40 = vor.u32 %v915_v35, %v796_v34  ;;  %v790_v45 = vld [vmem:[#allocation6 + $0x18] sm:$0xf0]  ;;  %s649_s30 = sshll.u32 %s645_s7, 4  ;;  %s650_s30 = int_to_ptr.hbm [resolvable:$true] %s649_s30 }
  0x37   : > { %597 = vmatpush.bf16.msra.mxu2 %v932_v30  ;;  %v931_v38 = vld [vmem:[#allocation9 + $0x28] sm:$0xff]  ;;  %v801_v41 = vor.u32 %v914_v36, %v798_v37  ;;  %v913_v43 = vld [vmem:[#allocation6 + $0x14] sm:$0xf0]  ;;  %v912_v44 = vld [vmem:[#allocation6 + $0x14] sm:$0xf]  ;;  %s635_s21 = scalar_lea.sflag [#allocation5], %s1402_s11 }
  0x38   : > { %439 = vmatpush.bf16.msra.mxu0 %v821_v16  ;;  %610 = vmatpush.bf16.msra.mxu3 %v940_v31  ;;  %v939_v39 = vld [vmem:[#allocation9 + $0x68] sm:$0xff]  ;;  %v930_v46 = vld [vmem:[#allocation9 + $0x20] sm:$0xff]  ;;  %v793_v49 = vor.u32 %v912_v44, %v790_v45  ;;  %v929_v54 = vld [vmem:[#allocation9 + $0x18] sm:$0xff]  ;;  %s1174_s6 = sshra.s32 %s650_s30, 4  ;;  %s1180_s25 = scalar_lea.hbm %s1471_s5, 16  ;;  %s1175_s6 = int_to_ptr.hbm [resolvable:$true] %s1174_s6 }
  0x39   : > { %452 = vmatpush.bf16.msra.mxu1 %v825_v17  ;;  %v788_v42 = vld [vmem:[#allocation6 + $0x10] sm:$0xf]  ;;  %v938_v47 = vld [vmem:[#allocation9 + $0x60] sm:$0xff]  ;;  %v782_v53 = vld [vmem:[#allocation6 + $0x8] sm:$0xf0]  ;;  %s1176_s9 = scalar_lea.hbm %s1175_s6, 8  ;;  %p1181_p10 = scmp.lt.s32.totalorder %s1175_s6, %s1471_s5 }
  0x3a   : > { %v789_v48 = vor.u32 %v913_v43, %v788_v42  ;;  %v780_v50 = vld [vmem:[#allocation6] sm:$0xf]  ;;  %v911_v51 = vld [vmem:[#allocation6 + $0x4] sm:$0xf0]  ;;  %v910_v52 = vld [vmem:[#allocation6 + $0x4] sm:$0xf]  ;;  %p1177_p1 = scmp.ne.s32.totalorder %s1175_s6, %s1176_s9  ;;  %p1182_p11 = scmp.lt.s32.totalorder %s1180_s25, %s1176_s9 }
  0x3b   : > { %598 = vmatpush.bf16.msra.mxu2 %v931_v38  ;;  %v937_v55 = vld [vmem:[#allocation9 + $0x58] sm:$0xff]  ;;  %v781_v56 = vor.u32 %v911_v51, %v780_v50  ;;  %v785_v58 = vor.u32 %v910_v52, %v782_v53  ;;  %v928_v59 = vld [vmem:[#allocation9 + $0x10] sm:$0xff]  ;;  %v927_v62 = vld [vmem:[#allocation9 + $0x8] sm:$0xff] }
  0x3c   : > { %440 = vmatpush.bf16.msra.mxu0 %v813_v22  ;;  %611 = vmatpush.bf16.msra.mxu3 %v939_v39  ;;  %v333_v57 = vld [vmem:[%s1408_s26] sm:$0xff]  ;;  %v926_v0 = vld [vmem:[#allocation9] sm:$0xff]  ;;  %v351_v2 = vld [vmem:[#allocation8] sm:$0x3]  ;;  %p1178_p3 = pnand %p1177_p1, %p1380_p4  ;;  %p1183_p12 = por %p1182_p11, %p1181_p10 }
  0x3d   : > { %453 = vmatpush.bf16.msra.mxu1 %v817_v25  ;;  %v936_v60 = vld [vmem:[#allocation9 + $0x50] sm:$0xff]  ;;  %v334_v61 = vpack.c.bf16 %v333_v57, %v333_v57  ;;  %v935_v63 = vld [vmem:[#allocation9 + $0x48] sm:$0xff]  ;;  %v934_v1 = vld [vmem:[#allocation9 + $0x40] sm:$0xff]  ;;  %v353_v3 = vperm.slane %v351_v2, 0  ;;  %v354_v4 = vperm.slane %v351_v2, 1 }
  0x3e   : > { %v1039_v16 = vld [vmem:[%s1470_s4] ss:$0 sm:$0xff]  ;;  %p1179_p9 = pneg %p1178_p3 }
  0x3f   : > { %599 = vmatpush.bf16.msra.mxu2 %v930_v46 }
  0x40   : > { %441 = vmatpush.bf16.msra.mxu0 %v805_v32  ;;  %612 = vmatpush.bf16.msra.mxu3 %v938_v47  ;;  %p1184_p13 = pnand %p1183_p12, %p1179_p9 }
  0x41   : > { %454 = vmatpush.bf16.msra.mxu1 %v809_v33 }
  0x43   : > { %600 = vmatpush.bf16.msra.mxu2 %v929_v54 }
  0x44   : > { %442 = vmatpush.bf16.msra.mxu0 %v797_v40  ;;  %613 = vmatpush.bf16.msra.mxu3 %v937_v55 }
  0x45   : > { %455 = vmatpush.bf16.msra.mxu1 %v801_v41 }
  0x47   : > { %601 = vmatpush.bf16.msra.mxu2 %v928_v59 }
  0x48   : > { %443 = vmatpush.bf16.msra.mxu0 %v789_v48  ;;  %614 = vmatpush.bf16.msra.mxu3 %v936_v60 }
  0x49   : > { %456 = vmatpush.bf16.msra.mxu1 %v793_v49 }
  0x4b   : > { %602 = vmatpush.bf16.msra.mxu2 %v927_v62 }
  0x4c   : > { %444 = vmatpush.bf16.msra.mxu0 %v781_v56  ;;  %615 = vmatpush.bf16.msra.mxu3 %v935_v63 }
  0x4d   : > { %457 = vmatpush.bf16.msra.mxu1 %v785_v58 }
  0x4f   : > { %445 = vmatmul.bf16.vlgmr.msra.gmra.mxu0 %v334_v61  ;;  %603 = vmatpush.bf16.msra.mxu2 %v926_v0 }
  0x50   : > { %458 = vmatmul.bf16.vlgmr.msra.gmra.mxu1 %v334_v61  ;;  %616 = vmatpush.bf16.msra.mxu3 %v934_v1 }
  0xcc   : > { %v446_v5 = vpop.f32.mrf.mxu0 }
  0xcd   : > { %v447_v6 = vadd.f32 %v446_v5, %v353_v3  ;;  %v459_v7 = vpop.f32.mrf.mxu1 }
  0xce   : > { %v460_v8 = vadd.f32 %v459_v7, %v354_v4 }
  0xcf   : > { %v463_v9 = vmax.f32 %v447_v6, 0.0 }
  0xd0   : > { %v464_v10 = vmax.f32 %v460_v8, 0.0 }
  0xd1   : > { %v466_v11 = vpack.c.bf16 %v463_v9, %v463_v9 }
  0xd2   : > { %v467_v12 = vpack.c.bf16 %v464_v10, %v464_v10 }
  0xd3   : > { %604 = vmatmul.bf16.vlgmr.msra.gmra.mxu2 %v466_v11 }
  0xd4   : > { %617 = vmatmul.bf16.vlgmr.msra.gmra.mxu3 %v467_v12  ;;  %v448_v13 = vpop.f32.mrf.mxu0 }
  0xd5   : > { %v461_v14 = vpop.f32.mrf.mxu1 }
 0x156   : > { %v605_v15 = vpop.f32.mrf.mxu2 }
 0x157   : > { %v618_v17 = vpop.f32.mrf.mxu3 }
 0x158   : > { %v619_v18 = vadd.f32 %v618_v17, %v605_v15 }
 0x15a   : > { %v632_v19 = vadd.f32 %v1039_v16, %v619_v18 }
 0x15c   : > { %633 = vst [vmem:[%s324_s24] sm:$0xff] %v632_v19 }
 0x15d   : > { %1187 = shalt.err (!%p1184_p13)
}
 0x15e   : > { %956 = dma.vmem_to_hbm [thread:$0]  (%p1380_p4), %s648_s28, 128, %s650_s30, %s635_s21   ;;  %v607_v20 = vpop.f32.mrf.mxu2 }
 0x15f   : > { %v620_v21 = vpop.f32.mrf.mxu3 }
 0x160 PF: > { %s661_s11 = sand.u32 1, %s1230_s18   ;;  %p973_p0 = pnand %p769_p6, %p1388_p7 }
 0x161   : > { %s662_s10 = scalar_lea.sflag [#allocation5], %s661_s11 }
 0x162   : > { %p974_p2 = pneg %p973_p0 }
 0x164   : > { %1225 = dma.done.wait (%p974_p2), %s662_s10, 128  }
 0x165   : > { %1227 = vsyncadd (%p974_p2), %s662_s10, 4294967168  ;;  %s23_s23 = sadd.s32 1, %s1250_s23   ;;  %s1479_s18 = smov %s1234_s19 }
 0x166   : > { %p20_p5 = scmp.ge.s32.totalorder %s23_s23, 4   ;;  %s1480_s19 = smov %s1238_s20 }
 0x167   : > { %s1481_s20 = smov %s1386_s13  ;;  %s1482_s21 = smov %s1246_s22 }
 0x168   : > { %s1483_s22 = smov %s1485_s8  ;;  %22 = sbr.rel (!%p20_p5) target bundleno = 8 (0x8), region = 108 }
 0x16d   :  { %668 = vsyncpa [#allocation4], 1 }
 0x16e   :  { %670 = vsyncpa [#allocation4 + $0x1], 1 }
 0x16f   :  { %671 = vsyncpa [#allocation7], 1 }
 0x170   :  { %672 = vsyncpa [#allocation10], 1 }
 0x171   :  { %673 = vsyncpa [#allocation5], 1 }
 0x172   :  { %675 = vsyncpa [#allocation5 + $0x1], 1 }

</bundles_post_ra>
